<compile_context>
chip_gen: v7x
topology: tpu7x:2x2x1
jax: 0.10.0
libtpu: 0.0.40
codegen_flags: <defaults>
</compile_context>

<pallas_src>
import functools

import jax
import jax.numpy as jnp
from jax.experimental import pallas as pl
from jax.experimental.pallas import tpu as pltpu


def widthnet_kernel(x_ref, w1_ref, b1_ref, w2_ref, b2_ref, w3_ref, b3_ref, o_ref):
    # x_ref: (C, tile_n) slab of one batch element (NCW layout, N on lanes).
    # w*_ref: (out, in) conv1d weights (kernel-size-1 squeezed), b*_ref: (out, 1).
    x = x_ref[...].astype(w1_ref.dtype)  # bf16 for the MXU; no extra HBM traffic

    # conv1 (1x1) + ReLU: (C, C) @ (C, tile_n) -> (C, tile_n), f32 accumulate.
    h1 = jnp.dot(w1_ref[...], x, preferred_element_type=jnp.float32)
    h1 = jnp.maximum(h1 + b1_ref[...], 0.0)

    # conv2 (1x1) + ReLU: (2C, C) @ (C, tile_n) -> (2C, tile_n).
    h2 = jnp.dot(w2_ref[...], h1.astype(w2_ref.dtype),
                 preferred_element_type=jnp.float32)
    h2 = jnp.maximum(h2 + b2_ref[...], 0.0)

    # conv3 (1x1) + output ReLU: (out_dim, 2C) @ (2C, tile_n) -> (out_dim, tile_n).
    # tile_n sits on the lane axis -> lane-dense, unmasked stores.
    h3 = jnp.dot(w3_ref[...], h2.astype(w3_ref.dtype),
                 preferred_element_type=jnp.float32)
    h3 = jnp.maximum(h3 + b3_ref[...], 0.0)

    o_ref[...] = h3.astype(o_ref.dtype)


def width_net_forward(seed_features, params, *, max_tile_n=2048,
                      compute_dtype=jnp.bfloat16):
    """seed_features: (B, C, N) float32  ->  grasp_width_pred (B, N, out_dim) float32."""
    w1, b1, w2, b2, w3, b3 = params
    B, C, N = seed_features.shape
    out_dim = w3.shape[0]

    # Pick a lane-dense tile along N. Small N -> single full-extent tile
    # (no pipelining overhead); large N -> big multiple-of-128 tiles + padding.
    max_tile_n = max(128, (max_tile_n // 128) * 128)
    if N <= max_tile_n:
        tile_n, n_pad = N, N
    else:
        tile_n = max_tile_n
        n_pad = pl.cdiv(N, tile_n) * tile_n

    x = seed_features
    if n_pad != N:
        # Zero-pad along N; 1x1 convs are position-wise so padded columns are
        # independent garbage that we slice off below (no recompile per N tile).
        x = jnp.pad(x, ((0, 0), (0, 0), (0, n_pad - N)))

    # Weights are tiny: pre-cast once to the matmul dtype.
    w1c = w1.astype(compute_dtype)
    w2c = w2.astype(compute_dtype)
    w3c = w3.astype(compute_dtype)

    grid = (B, n_pad // tile_n)

    out = pl.pallas_call(
        widthnet_kernel,
        out_shape=jax.ShapeDtypeStruct((B, out_dim, n_pad), jnp.float32),
        grid_spec=pltpu.PrefetchScalarGridSpec(
            num_scalar_prefetch=0,
            grid=grid,
            in_specs=[
                # Batch dim squeezed; (C, tile_n) slab, N on the lane axis.
                pl.BlockSpec((None, C, tile_n), lambda b, n: (b, 0, n)),
                pl.BlockSpec((C, C), lambda b, n: (0, 0)),
                pl.BlockSpec((C, 1), lambda b, n: (0, 0)),
                pl.BlockSpec((2 * C, C), lambda b, n: (0, 0)),
                pl.BlockSpec((2 * C, 1), lambda b, n: (0, 0)),
                pl.BlockSpec((out_dim, 2 * C), lambda b, n: (0, 0)),
                pl.BlockSpec((out_dim, 1), lambda b, n: (0, 0)),
            ],
            out_specs=pl.BlockSpec((None, out_dim, tile_n), lambda b, n: (b, 0, n)),
        ),
        compiler_params=pltpu.CompilerParams(
            # Both grid axes are independent -> shard across v7x's 2 TCs.
            dimension_semantics=("parallel", "parallel"),
            # Explicit budget; per-step buffers are < 1 MiB at tile_n=2048 so
            # this is safely inside v7x's 64 MiB physical VMEM.
            vmem_limit_bytes=32 * 1024 * 1024,
        ),
    )(x, w1c, b1, w2c, b2, w3c, b3)

    if n_pad != N:
        out = out[:, :, :N]

    # Small final transpose (B, out_dim, N) -> (B, N, out_dim) == width_pred.
    return jnp.transpose(out, (0, 2, 1))


def init_params(key, seed_feature_dim, out_dim):
    """Deterministic synthetic params in conv1d layout: W (out, in), b (out, 1)."""
    C = seed_feature_dim
    ks = jax.random.split(key, 6)
    w1 = jax.random.normal(ks[0], (C, C), jnp.float32) * 0.1
    b1 = jax.random.normal(ks[1], (C, 1), jnp.float32) * 0.1
    w2 = jax.random.normal(ks[2], (2 * C, C), jnp.float32) * 0.1
    b2 = jax.random.normal(ks[3], (2 * C, 1), jnp.float32) * 0.1
    w3 = jax.random.normal(ks[4], (out_dim, 2 * C), jnp.float32) * 0.1
    b3 = jax.random.normal(ks[5], (out_dim, 1), jnp.float32) * 0.1
    return (w1, b1, w2, b2, w3, b3)


def reference_forward(seed_features, params, compute_dtype=jnp.float32):
    """Pure-JAX reference replicating the PyTorch forward in NCW layout."""
    w1, b1, w2, b2, w3, b3 = params

    def conv1x1_relu(x, w, b):
        y = jnp.einsum("oi,bin->bon", w.astype(compute_dtype), x.astype(compute_dtype),
                       preferred_element_type=jnp.float32)
        return jnp.maximum(y + b, 0.0)

    h = conv1x1_relu(seed_features, w1, b1)
    h = conv1x1_relu(h, w2, b2)
    h = conv1x1_relu(h, w3, b3)           # out_act is ReLU in the PyTorch module
    return jnp.transpose(h, (0, 2, 1))    # (B, N, out_dim) == width_pred


if __name__ == "__main__":
    # Small shapes consistent with the module: B=2, seed_feature_dim=32,
    # num_seed=16, out_dim=8.
    B, C, N, OUT = 2, 32, 16, 8

    key = jax.random.PRNGKey(0)
    k_x, k_p = jax.random.split(key)
    seed_features = jax.random.normal(k_x, (B, C, N), jnp.float32)
    params = init_params(k_p, C, OUT)

    width_pred = width_net_forward(seed_features, params)
    width_pred = jax.block_until_ready(width_pred)
    assert width_pred.shape == (B, N, OUT), width_pred.shape

    # Tight check vs a reference using the same bf16 matmul inputs.
    ref_bf16 = reference_forward(seed_features, params, compute_dtype=jnp.bfloat16)
    assert jnp.allclose(width_pred, ref_bf16, atol=1e-3, rtol=1e-3), "mismatch vs bf16 reference"

    # Loose sanity check vs the full-f32 reference (bf16 matmul rounding only).
    ref_f32 = reference_forward(seed_features, params, compute_dtype=jnp.float32)
    assert jnp.allclose(width_pred, ref_f32, atol=5e-2, rtol=5e-2), "mismatch vs f32 reference"

    # end_points['grasp_width_pred'] = width_pred  (dict glue kept outside the kernel)
    end_points = {"grasp_width_pred": width_pred}
    print("KERNEL_OK")
</pallas_src>

<mosaic_0001>
module attributes {stable_mosaic.version = 11 : i64} {
  func.func @widthnet_kernel(%arg0: i32, %arg1: i32, %arg2: memref<1x32x16xf32, #tpu.memory_space<vmem>>, %arg3: memref<32x32xbf16, #tpu.memory_space<vmem>>, %arg4: memref<32x1xf32, #tpu.memory_space<vmem>>, %arg5: memref<64x32xbf16, #tpu.memory_space<vmem>>, %arg6: memref<64x1xf32, #tpu.memory_space<vmem>>, %arg7: memref<8x64xbf16, #tpu.memory_space<vmem>>, %arg8: memref<8x1xf32, #tpu.memory_space<vmem>>, %arg9: memref<1x8x16xf32, #tpu.memory_space<vmem>>) attributes {dimension_semantics = [#tpu.dimension_semantics<parallel>, #tpu.dimension_semantics<parallel>], iteration_bounds = array<i64: 2, 1>, scalar_prefetch = 0 : i64, scratch_operands = 0 : i64, tpu.core_type = #tpu.core_type<tc>, window_params = [{transform_indices = @transform_0, window_bounds = array<i64: 1, 32, 16>}, {pipeline_mode = #tpu.pipeline_mode<synchronous>, transform_indices = @transform_1, window_bounds = array<i64: 32, 32>}, {pipeline_mode = #tpu.pipeline_mode<synchronous>, transform_indices = @transform_2, window_bounds = array<i64: 32, 1>}, {pipeline_mode = #tpu.pipeline_mode<synchronous>, transform_indices = @transform_3, window_bounds = array<i64: 64, 32>}, {pipeline_mode = #tpu.pipeline_mode<synchronous>, transform_indices = @transform_4, window_bounds = array<i64: 64, 1>}, {pipeline_mode = #tpu.pipeline_mode<synchronous>, transform_indices = @transform_5, window_bounds = array<i64: 8, 64>}, {pipeline_mode = #tpu.pipeline_mode<synchronous>, transform_indices = @transform_6, window_bounds = array<i64: 8, 1>}, {transform_indices = @transform_7, window_bounds = array<i64: 1, 8, 16>}]} {
    %c0 = arith.constant 0 : index
    %c0_0 = arith.constant 0 : index
    %c0_1 = arith.constant 0 : index
    %0 = vector.load %arg2[%c0, %c0_0, %c0_1] : memref<1x32x16xf32, #tpu.memory_space<vmem>>, vector<1x32x16xf32>
    %1 = vector.shape_cast %0 : vector<1x32x16xf32> to vector<32x16xf32>
    %2 = arith.truncf %1 : vector<32x16xf32> to vector<32x16xbf16>
    %c0_2 = arith.constant 0 : index
    %c0_3 = arith.constant 0 : index
    %3 = vector.load %arg3[%c0_2, %c0_3] : memref<32x32xbf16, #tpu.memory_space<vmem>>, vector<32x32xbf16>
    %cst = arith.constant dense<0.000000e+00> : vector<32x16xf32>
    %4 = tpu.matmul %3, %2, %cst {dimension_numbers = #tpu.dot_dimension_numbers<[1], [0], [0], [1], [0, 0, 1, 1], [], []>} : vector<32x32xbf16>, vector<32x16xbf16>, vector<32x16xf32> -> vector<32x16xf32>
    %c0_4 = arith.constant 0 : index
    %c0_5 = arith.constant 0 : index
    %5 = vector.load %arg4[%c0_4, %c0_5] : memref<32x1xf32, #tpu.memory_space<vmem>>, vector<32x1xf32>
    %6 = vector.broadcast %5 : vector<32x1xf32> to vector<32x16xf32>
    %7 = arith.addf %4, %6 : vector<32x16xf32>
    %cst_6 = arith.constant 0.000000e+00 : f32
    %8 = vector.broadcast %cst_6 : f32 to vector<32x16xf32>
    %9 = arith.maximumf %7, %8 : vector<32x16xf32>
    %c0_7 = arith.constant 0 : index
    %c0_8 = arith.constant 0 : index
    %10 = vector.load %arg5[%c0_7, %c0_8] : memref<64x32xbf16, #tpu.memory_space<vmem>>, vector<64x32xbf16>
    %11 = arith.truncf %9 : vector<32x16xf32> to vector<32x16xbf16>
    %cst_9 = arith.constant dense<0.000000e+00> : vector<64x16xf32>
    %12 = tpu.matmul %10, %11, %cst_9 {dimension_numbers = #tpu.dot_dimension_numbers<[1], [0], [0], [1], [0, 0, 1, 1], [], []>} : vector<64x32xbf16>, vector<32x16xbf16>, vector<64x16xf32> -> vector<64x16xf32>
    %c0_10 = arith.constant 0 : index
    %c0_11 = arith.constant 0 : index
    %13 = vector.load %arg6[%c0_10, %c0_11] : memref<64x1xf32, #tpu.memory_space<vmem>>, vector<64x1xf32>
    %14 = vector.broadcast %13 : vector<64x1xf32> to vector<64x16xf32>
    %15 = arith.addf %12, %14 : vector<64x16xf32>
    %cst_12 = arith.constant 0.000000e+00 : f32
    %16 = vector.broadcast %cst_12 : f32 to vector<64x16xf32>
    %17 = arith.maximumf %15, %16 : vector<64x16xf32>
    %c0_13 = arith.constant 0 : index
    %c0_14 = arith.constant 0 : index
    %18 = vector.load %arg7[%c0_13, %c0_14] : memref<8x64xbf16, #tpu.memory_space<vmem>>, vector<8x64xbf16>
    %19 = arith.truncf %17 : vector<64x16xf32> to vector<64x16xbf16>
    %cst_15 = arith.constant dense<0.000000e+00> : vector<8x16xf32>
    %20 = tpu.matmul %18, %19, %cst_15 {dimension_numbers = #tpu.dot_dimension_numbers<[1], [0], [0], [1], [0, 0, 1, 1], [], []>} : vector<8x64xbf16>, vector<64x16xbf16>, vector<8x16xf32> -> vector<8x16xf32>
    %c0_16 = arith.constant 0 : index
    %c0_17 = arith.constant 0 : index
    %21 = vector.load %arg8[%c0_16, %c0_17] : memref<8x1xf32, #tpu.memory_space<vmem>>, vector<8x1xf32>
    %22 = vector.broadcast %21 : vector<8x1xf32> to vector<8x16xf32>
    %23 = arith.addf %20, %22 : vector<8x16xf32>
    %cst_18 = arith.constant 0.000000e+00 : f32
    %24 = vector.broadcast %cst_18 : f32 to vector<8x16xf32>
    %25 = arith.maximumf %23, %24 : vector<8x16xf32>
    %c0_19 = arith.constant 0 : index
    %c0_20 = arith.constant 0 : index
    %c0_21 = arith.constant 0 : index
    %26 = vector.load %arg9[%c0_19, %c0_20, %c0_21] : memref<1x8x16xf32, #tpu.memory_space<vmem>>, vector<1x8x16xf32>
    %27 = vector.shape_cast %26 : vector<1x8x16xf32> to vector<8x16xf32>
    %28 = vector.shape_cast %25 : vector<8x16xf32> to vector<1x8x16xf32>
    tpu.vector_store %arg9[%c0_19, %c0_20, %c0_21], %28 {strides = array<i32>} : memref<1x8x16xf32, #tpu.memory_space<vmem>>, vector<1x8x16xf32>,
    return
  }
  func.func @transform_0(%arg0: i32, %arg1: i32) -> (i32, i32, i32) {
    %c0_i32 = arith.constant 0 : i32
    %c0_i32_0 = arith.constant 0 : i32
    return %arg0, %c0_i32, %arg1 : i32, i32, i32
  }
  func.func @transform_1(%arg0: i32, %arg1: i32) -> (i32, i32) {
    %c0_i32 = arith.constant 0 : i32
    %c0_i32_0 = arith.constant 0 : i32
    %c0_i32_1 = arith.constant 0 : i32
    return %c0_i32, %c0_i32_0 : i32, i32
  }
  func.func @transform_2(%arg0: i32, %arg1: i32) -> (i32, i32) {
    %c0_i32 = arith.constant 0 : i32
    %c0_i32_0 = arith.constant 0 : i32
    %c0_i32_1 = arith.constant 0 : i32
    return %c0_i32, %c0_i32_0 : i32, i32
  }
  func.func @transform_3(%arg0: i32, %arg1: i32) -> (i32, i32) {
    %c0_i32 = arith.constant 0 : i32
    %c0_i32_0 = arith.constant 0 : i32
    %c0_i32_1 = arith.constant 0 : i32
    return %c0_i32, %c0_i32_0 : i32, i32
  }
  func.func @transform_4(%arg0: i32, %arg1: i32) -> (i32, i32) {
    %c0_i32 = arith.constant 0 : i32
    %c0_i32_0 = arith.constant 0 : i32
    %c0_i32_1 = arith.constant 0 : i32
    return %c0_i32, %c0_i32_0 : i32, i32
  }
  func.func @transform_5(%arg0: i32, %arg1: i32) -> (i32, i32) {
    %c0_i32 = arith.constant 0 : i32
    %c0_i32_0 = arith.constant 0 : i32
    %c0_i32_1 = arith.constant 0 : i32
    return %c0_i32, %c0_i32_0 : i32, i32
  }
  func.func @transform_6(%arg0: i32, %arg1: i32) -> (i32, i32) {
    %c0_i32 = arith.constant 0 : i32
    %c0_i32_0 = arith.constant 0 : i32
    %c0_i32_1 = arith.constant 0 : i32
    return %c0_i32, %c0_i32_0 : i32, i32
  }
  func.func @transform_7(%arg0: i32, %arg1: i32) -> (i32, i32, i32) {
    %c0_i32 = arith.constant 0 : i32
    %c0_i32_0 = arith.constant 0 : i32
    return %arg0, %c0_i32, %arg1 : i32, i32, i32
  }
}

</mosaic_0001>

<bundles_post_ra>
// kernel: tpu_custom_call.1
= control target key start
LH: loop header
LB: loop body
LE: loop exit
PB: predicated region body
PF: predicated region fallthrough
CT: control target
= control target key end

     0   :  { %12 = vsyncpa [#allocation3], 0  ;;  %s1158_s0 = inlined_call_operand.vmem [shape: f32[2,32,16], index: 0, kind: input, shape index: {}]   ;;  %s1159_s1 = inlined_call_operand.vmem [shape: bf16[32,32], index: 1, kind: input, shape index: {}]   ;;  %s1160_s2 = inlined_call_operand.vmem [shape: f32[32,1], index: 2, kind: input, shape index: {}]   ;;  %s1161_s3 = inlined_call_operand.vmem [shape: bf16[64,32], index: 3, kind: input, shape index: {}]   ;;  %s1162_s4 = inlined_call_operand.vmem [shape: f32[64,1], index: 4, kind: input, shape index: {}]   ;;  %s1163_s5 = inlined_call_operand.vmem [shape: bf16[8,64], index: 5, kind: input, shape index: {}]   ;;  %s1164_s6 = inlined_call_operand.vmem [shape: f32[8,1], index: 6, kind: input, shape index: {}]   ;;  %s1165_s7 = inlined_call_operand.hbm [shape: f32[2,8,16], index: 7, kind: output, shape index: {}]  }
   0x1   :  { %14 = vsyncpa [#allocation3 + $0x1], 0  ;;  %s980_s24 = smov 0   ;;  %s982_s25 = smov 0  }
   0x2   :  { %s984_s26 = smov 0   ;;  %s986_s27 = smov 0  }
   0x3   :  { %s988_s28 = smov 0   ;;  %s990_s29 = smov 0  }
   0x4 LB: > { %s717_s30 = sadd.s32 4294967295, %s934_s29   ;;  %s718_s8 = sadd.s32 4294967294, %s934_s29   ;;  %s934_s29 = sphi %s990_s29, %s20_s29   ;;  %s930_s28 = sphi %s988_s28, %s1172_s28   ;;  %s926_s27 = sphi %s986_s27, %s1171_s27   ;;  %s922_s26 = sphi %s984_s26, %s1170_s26   ;;  %s918_s25 = sphi %s982_s25, %s1169_s25   ;;  %s914_s24 = sphi %s980_s24, %s1168_s24  }
   0x5   : > { %s32_s9 = sadd.s32 1, %s930_s28  ;;  %s195_s10 = sadd.s32 1, %s922_s26 }
   0x6   : > { %p34_p0 = scmp.ge.s32.totalorder %s32_s9, 2  ;;  %p205_p1 = scmp.ne.s32.totalorder %s922_s26, %s918_s25 }
   0x7   : > { %p206_p2 = scmp.eq.s32.totalorder %s717_s30, 1  ;;  %p211_p3 = scmp.ne.s32.totalorder %s918_s25, %s914_s24 }
   0x8   : > { %s1174_s9 = smov (%p34_p0, %s32_s9), 0  ;;  %p212_p5 = scmp.eq.s32.totalorder %s718_s8, 1 }
   0x9   : > { %p1020_p4 = por %p206_p2, %p205_p1  ;;  %s190_s12 = ssub.s32 %s930_s28, %s1174_s9 }
   0xa   : > { %p721_p6 = scmp.ge.s32.totalorder %s934_s29, 1  ;;  %p193_p7 = scmp.eq.s32.totalorder %s190_s12, 0 }
   0xb   : > { %p1027_p8 = por %p212_p5, %p211_p3  ;;  %p259_p9 = scmp.lt.s32.totalorder %s934_s29, 3 }
   0xc   : > { %s1033_s14 = scalar_select %p193_p7, %s922_s26, %s195_s10  }
   0xd   : > { %p260_p10 = pnand %p721_p6, %p259_p9 }
   0xe   : > { %p294_p11 = scmp.lt.s32.totalorder (!%p260_p10), %s926_s27, 1  ;;  %v850_v0 = vld [vmem:[%s1159_s1] sm:$0xff] (!%p260_p10)   ;;  %vm347_vm0 = vcmask (!%p260_p10), 261120   ;;  %v315_v2 = vld [vmem:[%s1160_s2 + $0x10] sm:$0xff] (!%p260_p10)  ;;  %v936_v3 = vmov (!%p260_p10), 0   ;;  %v314_v4 = vld [vmem:[%s1160_s2 + $0x8] sm:$0xff] (!%p260_p10) }
   0xf   : > { %263 = sbr.rel (%p260_p10) target bundleno = 732 (0x2dc), region = 48  ;;  %762 = vmatprep.mubr.msk.bf16.mxu0 (!%p260_p10), %vm347_vm0, %v850_v0  ;;  %v313_v1 = vld [vmem:[%s1160_s2] sm:$0xff] (!%p260_p10)  ;;  %848 = vset.pattern.permute.xlu0 (!%p260_p10), %v936_v3  ;;  %v316_v5 = vld [vmem:[%s1160_s2 + $0x18] sm:$0xff] (!%p260_p10)  ;;  %v418_v12 = vld [vmem:[%s1162_s4 + $0x8] sm:$0xff] (!%p260_p10)  ;;  %v937_v44 = vmov (!%p260_p10), 0.0   ;;  %vm938_vm1 = vmmov (!%p260_p10), 0  }
  0x10   : > { %849 = vset.pattern.permute.xlu1 (!%p260_p10), %v936_v3  ;;  %319 = vperm.xlu0 (!%p260_p10), %848, %v313_v1   ;;  %v417_v11 = vld [vmem:[%s1162_s4] sm:$0xff] (!%p260_p10)  ;;  %v851_v14 = vld [vmem:[%s1159_s1 + $0x8] sm:$0xff] (!%p260_p10)   ;;  %v419_v15 = vld [vmem:[%s1162_s4 + $0x10] sm:$0xff] (!%p260_p10)  ;;  %vm581_vm2 = vcmask (!%p260_p10), 523264   ;;  %s291_s21 = sand.u32 (!%p260_p10), 1, %s918_s25   ;;  %s739_s23 = sshll.u32 (!%p260_p10), %s926_s27, 7 }
  0x11   : > { %329 = vperm.xlu1 (!%p260_p10), %849, %v315_v2   ;;  %v420_v16 = vld [vmem:[%s1162_s4 + $0x18] sm:$0xff] (!%p260_p10)  ;;  %v421_v17 = vld [vmem:[%s1162_s4 + $0x20] sm:$0xff] (!%p260_p10)  ;;  %v422_v18 = vld [vmem:[%s1162_s4 + $0x28] sm:$0xff] (!%p260_p10)  ;;  %vm626_vm3 = vcmask (!%p260_p10), 130048   ;;  %s1111_s15 = scalar_lea.hbm (!%p260_p10), %s1165_s7, %s739_s23 }
  0x12   : > { %v423_v19 = vld [vmem:[%s1162_s4 + $0x30] sm:$0xff] (!%p260_p10)  ;;  %v424_v20 = vld [vmem:[%s1162_s4 + $0x38] sm:$0xff] (!%p260_p10)  ;;  %v575_v21 = vld [vmem:[%s1164_s6] sm:$0xff] (!%p260_p10) }
  0x13   : > { %v852_v22 = vld [vmem:[%s1161_s3] sm:$0xff] (!%p260_p10)   ;;  %v853_v41 = vld [vmem:[%s1161_s3 + $0x8] sm:$0xff] (!%p260_p10)   ;;  %v854_v42 = vld [vmem:[%s1161_s3 + $0x10] sm:$0xff] (!%p260_p10)  }
  0x14   : > { %324 = vperm.xlu0 (!%p260_p10), %848, %v314_v4   ;;  %770 = vmatprep.mubr.msk.bf16.mxu1 (!%p260_p10), %vm347_vm0, %v852_v22  ;;  %v855_v43 = vld [vmem:[%s1161_s3 + $0x18] sm:$0xff] (!%p260_p10)  }
  0x15   : > { %334 = vperm.xlu1 (!%p260_p10), %849, %v316_v5  }
  0x16   : > { %s295_s17 = scalar_select %p294_p11, %s926_s27, 1 }
  0x17   : > { %s629_s27 = scalar_lea.sflag [#allocation3], %s291_s21 }
  0x18   : > { %s742_s22 = sshll.u32 %s295_s17, 5  ;;  %427 = vperm.xlu0 %848, %v417_v11   ;;  %s939_s17 = smov [#allocation2]  }
  0x19   : > { %s301_s8 = scalar_lea.vmem %s1158_s0, %s742_s22  ;;  %432 = vperm.xlu1 %849, %v418_v12   ;;  %s722_s22 = sshll.u32 %s291_s21, 3 }
  0x1a   : > { %v303_v6 = vld [vmem:[%s301_s8] sm:$0xff]  ;;  %v304_v7 = vld [vmem:[%s301_s8 + $0x8] sm:$0xff]  ;;  %v305_v8 = vld [vmem:[%s301_s8 + $0x10] sm:$0xff]  ;;  %s293_s30 = scalar_lea.vmem [#allocation2], %s722_s22  ;;  %s860_s18 = sshll.u32 %s939_s17, 4  ;;  %s861_s18 = int_to_ptr.vmem [resolvable:$false] %s860_s18 }
  0x1b   : > { %v307_v9 = vpack.c.bf16 %v304_v7, %v303_v6  ;;  %v306_v10 = vld [vmem:[%s301_s8 + $0x18] sm:$0xff]  ;;  %s643_s8 = sshll.u32 %s293_s30, 4  ;;  %s862_s19 = scalar_lea.vmem %s861_s18, 256  ;;  %s1113_s8 = int_to_ptr.vmem [resolvable:$true] %s643_s8 }
  0x1c   : > { %v308_v13 = vpack.c.bf16 %v306_v10, %v305_v8  ;;  %437 = vperm.xlu0 %848, %v419_v15   ;;  %s856_s16 = scalar_lea.vmem %s1113_s8, 128  ;;  %p863_p1 = scmp.lt.s32.totalorder %s1113_s8, %s861_s18 }
  0x1d   : > { %758 = vmatprep.subr.bf16.mxu0 %v307_v9  ;;  %442 = vperm.xlu1 %849, %v420_v16   ;;  %p857_p12 = scmp.ne.s32.totalorder %s1113_s8, %s856_s16  ;;  %p864_p2 = scmp.lt.s32.totalorder %s862_s19, %s856_s16 }
  0x1e   : > { %759 = vmatpush3.bf16.msra.mxu0 %v307_v9 }
  0x1f   : > { %760 = vmatprep.subr.bf16.mxu0 %v308_v13  ;;  %p858_p13 = pnand %p857_p12, %p1020_p4  ;;  %p865_p3 = por %p864_p2, %p863_p1 }
  0x20   : > { %447 = vperm.xlu0 %848, %v421_v17   ;;  %v570_v17 = vld [vmem:[%s1163_s5] sm:$0xf] }
  0x21   : > { %452 = vperm.xlu1 %849, %v422_v18   ;;  %p859_p0 = pneg %p858_p13 }
  0x22   : > { %761 = vmatpush3.bf16.msra.mxu0 %v308_v13 }
  0x23   : > { %778 = vmatprep.subr.bf16.mxu0 %v937_v44  ;;  %p866_p5 = pnand %p865_p3, %p859_p0 }
  0x24   : > { %457 = vperm.xlu0 %848, %v423_v19  }
  0x25   : > { %763 = vmatmul.mubr.msk.bf16.vlgmr.msra.gmra.mrb[0].mxu0 %vm347_vm0, %v851_v14  ;;  %462 = vperm.xlu1 %849, %v424_v20  }
  0x26   : > { %786 = vmatprep.mubr.msk.bf16.mxu0 %vm938_vm1, %v937_v44 }
  0x28   : > { %578 = vperm.xlu0 %848, %v575_v21  }
  0x8f   : > { %v320_v24 = vpop.permute.xlu0 %319 }
  0x90   : > { %v330_v23 = vpop.permute.xlu1 %329 }
  0x93   : > { %v325_v31 = vpop.permute.xlu0 %324 }
  0x94   : > { %v335_v28 = vpop.permute.xlu1 %334 }
  0x97   : > { %v428_v45 = vpop.permute.xlu0 %427 }
  0x98   : > { %v433_v46 = vpop.permute.xlu1 %432 }
  0x9b   : > { %v438_v47 = vpop.permute.xlu0 %437 }
  0x9c   : > { %v443_v48 = vpop.permute.xlu1 %442 }
  0x9f   : > { %v448_v52 = vpop.permute.xlu0 %447 }
  0xa0   : > { %v453_v57 = vpop.permute.xlu1 %452 }
  0xa3   : > { %v458_v0 = vpop.permute.xlu0 %457 }
  0xa4   : > { %v463_v5 = vpop.permute.xlu1 %462 }
  0xa7   : > { %v579_v18 = vpop.permute.xlu0 %578 }
  0xf8   : > { %v764_v25 = vpop.f32.mrb[0].mxu0 }
  0xf9   : > { %v397_v26 = vadd.f32 %v764_v25, %v330_v23  ;;  %v388_v27 = vpop.f32.mrb[1].mxu0 }
  0xfa   : > { %v389_v29 = vadd.f32 %v388_v27, %v320_v24  ;;  %v765_v30 = vpop.f32.mrb[2].mxu0 }
  0xfb   : > { %v400_v32 = vadd.f32 %v765_v30, %v335_v28  ;;  %v391_v33 = vpop.f32.mrb[3].mxu0  ;;  %v405_v35 = vmax.f32 %v397_v26, 0.0 }
  0xfc   : > { %v392_v34 = vadd.f32 %v391_v33, %v325_v31  ;;  %v403_v37 = vmax.f32 %v389_v29, 0.0 }
  0xfd   : > { %v406_v36 = vmax.f32 %v400_v32, 0.0 }
  0xfe   : > { %v404_v38 = vmax.f32 %v392_v34, 0.0 }
  0xff   : > { %v416_v39 = vpack.c.bf16 %v406_v36, %v405_v35 }
 0x100   : > { %v415_v40 = vpack.c.bf16 %v404_v38, %v403_v37 }
 0x102   : > { %766 = vmatprep.subr.bf16.mxu1 %v415_v40 }
 0x103   : > { %767 = vmatpush3.bf16.msra.mxu1 %v415_v40 }
 0x104   : > { %768 = vmatprep.subr.bf16.mxu1 %v416_v39 }
 0x107   : > { %769 = vmatpush3.bf16.msra.mxu1 %v416_v39 }
 0x10a   : > { %771 = vmatmul.mubr.msk.bf16.vlgmr.msra.gmra.mrb[0].mxu1 %vm347_vm0, %v853_v41 }
 0x10b   : > { %774 = vmatprep.mubr.msk.bf16.mxu1 %vm347_vm0, %v854_v42 }
 0x112   : > { %775 = vmatmul.mubr.msk.bf16.gmra.mrb[4].mxu1 %vm347_vm0, %v855_v43 }
 0x1dd   : > { %v772_v49 = vpop.f32.mrb[0].mxu1 }
 0x1de   : > { %v540_v50 = vadd.f32 %v772_v49, %v438_v47  ;;  %v531_v51 = vpop.f32.mrb[1].mxu1 }
 0x1df   : > { %v532_v53 = vadd.f32 %v531_v51, %v428_v45  ;;  %v773_v54 = vpop.f32.mrb[2].mxu1 }
 0x1e0   : > { %v543_v55 = vadd.f32 %v773_v54, %v443_v48  ;;  %v534_v56 = vpop.f32.mrb[3].mxu1  ;;  %v564_v59 = vmax.f32 %v540_v50, 0.0 }
 0x1e1   : > { %v535_v58 = vadd.f32 %v534_v56, %v433_v46  ;;  %v562_v61 = vmax.f32 %v532_v53, 0.0 }
 0x1e2   : > { %v565_v60 = vmax.f32 %v543_v55, 0.0 }
 0x1e3   : > { %v563_v62 = vmax.f32 %v535_v58, 0.0 }
 0x1e4   : > { %v572_v63 = vpack.c.bf16 %v565_v60, %v564_v59 }
 0x1e5   : > { %v571_v1 = vpack.c.bf16 %v563_v62, %v562_v61  ;;  %v776_v2 = vpop.f32.mrb[4].mxu1 }
 0x1e6   : > { %v556_v3 = vadd.f32 %v776_v2, %v458_v0  ;;  %v547_v4 = vpop.f32.mrb[5].mxu1 }
 0x1e7   : > { %v548_v6 = vadd.f32 %v547_v4, %v448_v52  ;;  %v777_v7 = vpop.f32.mrb[6].mxu1  ;;  %779 = vmatpush3.bf16.msra.mxu0 %v571_v1 }
 0x1e8   : > { %v559_v8 = vadd.f32 %v777_v7, %v463_v5  ;;  %v550_v9 = vpop.f32.mrb[7].mxu1  ;;  %780 = vmatprep.subr.bf16.mxu0 %v937_v44  ;;  %v568_v11 = vmax.f32 %v556_v3, 0.0 }
 0x1e9   : > { %v551_v10 = vadd.f32 %v550_v9, %v453_v57  ;;  %v566_v13 = vmax.f32 %v548_v6, 0.0 }
 0x1ea   : > { %v569_v12 = vmax.f32 %v559_v8, 0.0 }
 0x1eb   : > { %v567_v14 = vmax.f32 %v551_v10, 0.0  ;;  %781 = vmatpush3.bf16.msra.mxu0 %v572_v63 }
 0x1ec   : > { %v574_v15 = vpack.c.bf16 %v569_v12, %v568_v11  ;;  %782 = vmatprep.subr.bf16.mxu0 %v937_v44 }
 0x1ed   : > { %v573_v16 = vpack.c.bf16 %v567_v14, %v566_v13 }
 0x1ef   : > { %783 = vmatpush3.bf16.msra.mxu0 %v573_v16 }
 0x1f0   : > { %784 = vmatprep.subr.bf16.mxu0 %v937_v44 }
 0x1f3   : > { %785 = vmatpush3.bf16.msra.mxu0 %v574_v15 }
 0x1f6   : > { %787 = vmatmul.mubr.msk.bf16.vlgmr.msra.gmra.mrb[4].mxu0 %vm581_vm2, %v570_v17 }
 0x2c9   : > { %v619_v19 = vpop.f32.mrb[4].mxu0 }
 0x2ca   : > { %v620_v20 = vadd.f32 %v619_v19, %v579_v18  ;;  %v788_v21 = vpop.f32.mrb[5].mxu0 }
 0x2cb   : > { %v622_v22 = vpop.f32.mrb[6].mxu0 }
 0x2cc   : > { %v625_v23 = vmax.f32 %v620_v20, 0.0  ;;  %v789_v24 = vpop.f32.mrb[7].mxu0 }
 0x2ce   : > { %627 = vst.msk [vmem:[%s293_s30] sm:$0xff] %vm626_vm3, %v625_v23 }
 0x2cf   : > { %869 = shalt.err (!%p866_p5)
}
 0x2d0   : > { %s870_s20 = scalar_lea.hbm %s1111_s15, 128  ;;  %s874_s23 = scalar_lea.hbm %s1165_s7, 256 }
 0x2d1   : > { %p871_p6 = scmp.ne.s32.totalorder %s1111_s15, %s870_s20  ;;  %p875_p10 = scmp.lt.u32.totalorder %s1111_s15, %s1165_s7 }
 0x2d2   : > { %p876_p11 = scmp.lt.u32.totalorder %s874_s23, %s870_s20  ;;  %p878_p13 = scmp.lt.u32.totalorder %s870_s20, %s1111_s15 }
 0x2d3   : > { %p872_p7 = pnand %p871_p6, %p1020_p4 }
 0x2d4   : > { %p877_p12 = por %p876_p11, %p875_p10 }
 0x2d5   : > { %p873_p9 = pneg %p872_p7 }
 0x2d6   : > { %p879_p0 = por %p878_p13, %p877_p12 }
 0x2d8   : > { %p880_p1 = pnand %p879_p0, %p873_p9 }
 0x2da   : > { %883 = shalt.err (!%p880_p1)
}
 0x2db   : > { %790 = dma.vmem_to_hbm [thread:$0]  (%p1020_p4), %s1113_s8, 128, %s1111_s15, %s629_s27  }
 0x2dc PF: > { %p796_p2 = scmp.ge.s32.totalorder %s934_s29, 2  ;;  %s655_s12 = sand.u32 1, %s914_s24  }
 0x2dd   : > { %s656_s16 = scalar_lea.sflag [#allocation3], %s655_s12 }
 0x2de   : > { %p793_p3 = pnand %p796_p2, %p1027_p8 }
 0x2e0   : > { %909 = dma.done.wait (!%p793_p3), %s656_s16, 128  }
 0x2e1   : > { %911 = vsyncadd (!%p793_p3), %s656_s16, 4294967168  ;;  %s20_s29 = sadd.s32 1, %s934_s29   ;;  %s1168_s24 = smov %s918_s25 }
 0x2e2   : > { %p17_p5 = scmp.ge.s32.totalorder %s20_s29, 4   ;;  %s1169_s25 = smov %s922_s26 }
 0x2e3   : > { %s1170_s26 = smov %s1033_s14  ;;  %s1171_s27 = smov %s930_s28 }
 0x2e4   : > { %s1172_s28 = smov %s1174_s9  ;;  %19 = sbr.rel (!%p17_p5) target bundleno = 4 (0x4), region = 83 }
 0x2eb   :  { %661 = vsyncpa [#allocation3], 1 }
 0x2ec   :  { %663 = vsyncpa [#allocation3 + $0x1], 1 }

</bundles_post_ra>
